<compile_context>
chip_gen: v7x
topology: tpu7x:2x2x1
jax: 0.10.0
libtpu: 0.0.40
codegen_flags: <defaults>
</compile_context>

<pallas_src>
import functools

import jax
import jax.numpy as jnp
from jax.experimental import pallas as pl
from jax.experimental.pallas import tpu as pltpu

EPS = 1e-5
LANES = 128
SUBLANES = 8


def _round_up(x, m):
    return (x + m - 1) // m * m


def _pad_axis(a, target, axis):
    pad = target - a.shape[axis]
    if pad <= 0:
        return a
    widths = [(0, 0)] * a.ndim
    widths[axis] = (0, pad)
    return jnp.pad(a, widths)


# --------------------------------------------------------------------------
# Kernel: one batch tile per grid step.  BatchNorms already folded into the
# weights/biases; output feature dims lane-padded to multiples of 128.
# --------------------------------------------------------------------------
def inner_autoencoder_kernel(
    x_ref,
    w0_ref, b0_ref,      # encoder: folded BN(nf)  + Linear(nf, 128)
    w1_ref, b1_ref,      # encoder: folded BN(128) + Linear(128, 64 -> pad 128)
    w2_ref, b2_ref,      # decoder: folded BN(64)  + Linear(64 -> pad 128, 128)
    w3_ref, b3_ref,      # decoder: Linear(128, nf -> pad 128)
    enc_ref, dec_ref,
):
    h = x_ref[...]

    # ---------------- encoder ----------------
    h = jnp.dot(h, w0_ref[...], preferred_element_type=jnp.float32) + b0_ref[...]
    h = jnp.maximum(h, 0.0)
    h = jnp.dot(h, w1_ref[...], preferred_element_type=jnp.float32) + b1_ref[...]
    h = jnp.maximum(h, 0.0)
    # TODO(synk): nn.Dropout(p) in train mode is stochastic; identity here (eval mode).

    enc_ref[...] = h.astype(enc_ref.dtype)   # padded lanes (>= h1) are exactly 0

    # ---------------- decoder ----------------
    d = jnp.dot(h, w2_ref[...], preferred_element_type=jnp.float32) + b2_ref[...]
    d = jnp.maximum(d, 0.0)
    d = jnp.dot(d, w3_ref[...], preferred_element_type=jnp.float32) + b3_ref[...]
    dec_ref[...] = jax.nn.sigmoid(d).astype(dec_ref.dtype)  # padded lanes -> 0.5, sliced off


# --------------------------------------------------------------------------
# Wrapper
# --------------------------------------------------------------------------
@functools.partial(jax.jit, static_argnames=("h1", "nf"))
def inner_autoencoder_forward(x, fp, *, h1, nf):
    """x: (B, n_features) f32.  fp: folded+padded params (fold_and_pad_params)."""
    B, nf_in = x.shape

    # Batch tile: multiple of 8 sublanes, capped at 512 rows.
    # (512 x 128 f32 tile = 256 KiB; x/enc/dec double-buffered + ~100 KiB of
    #  resident weights stays far below the scoped-VMEM default everywhere.)
    TB = min(512, _round_up(B, SUBLANES))
    B_pad = _round_up(B, TB)
    x_p = _pad_axis(x, B_pad, 0)

    w0, b0 = fp["w0"], fp["b0"]
    w1, b1 = fp["w1"], fp["b1"]
    w2, b2 = fp["w2"], fp["b2"]
    w3, b3 = fp["w3"], fp["b3"]
    H1P = w1.shape[1]   # padded encoded width  (multiple of 128)
    NFP = w3.shape[1]   # padded decoded width  (multiple of 128)

    # Weights/biases: full-array blocks with a constant index_map -> stay
    # VMEM-resident across all grid steps (no re-DMA per tile).
    const = lambda a: pl.BlockSpec(a.shape, lambda i: (0, 0))

    encoded, decoded = pl.pallas_call(
        inner_autoencoder_kernel,
        out_shape=(
            jax.ShapeDtypeStruct((B_pad, H1P), jnp.float32),
            jax.ShapeDtypeStruct((B_pad, NFP), jnp.float32),
        ),
        grid=(B_pad // TB,),
        in_specs=[
            pl.BlockSpec((TB, nf_in), lambda i: (i, 0)),
            const(w0), const(b0),
            const(w1), const(b1),
            const(w2), const(b2),
            const(w3), const(b3),
        ],
        out_specs=(
            pl.BlockSpec((TB, H1P), lambda i: (i, 0)),
            pl.BlockSpec((TB, NFP), lambda i: (i, 0)),
        ),
        compiler_params=pltpu.CompilerParams(
            dimension_semantics=("parallel",)),
    )(x_p, w0, b0, w1, b1, w2, b2, w3, b3)

    # Strip batch padding and lane padding.
    return encoded[:B, :h1], decoded[:B, :nf]


def fold_and_pad_params(params, n_features, hidden_neurons=(128, 64)):
    """Fold eval-mode BatchNorms into the following Linear and lane-pad.

    Run once outside jit; the result is what the kernel consumes.
    Linear weights here are (in, out) == PyTorch (out, in) transposed.
    """
    h0, h1 = hidden_neurons

    def fold(w, b, gamma, beta, mean, var):
        s = gamma * jax.lax.rsqrt(var + EPS)
        w_f = w * s[:, None]
        b_f = b + (beta - mean * s) @ w
        return w_f, b_f

    w0, b0 = fold(params["w0"], params["b0"], params["bn0_gamma"],
                  params["bn0_beta"], params["bn0_mean"], params["bn0_var"])
    w1, b1 = fold(params["w1"], params["b1"], params["bn1_gamma"],
                  params["bn1_beta"], params["bn1_mean"], params["bn1_var"])
    w2, b2 = fold(params["w2"], params["b2"], params["bn2_gamma"],
                  params["bn2_beta"], params["bn2_mean"], params["bn2_var"])
    w3, b3 = params["w3"], params["b3"]

    # Lane-pad output feature dims to multiples of 128 so stores are unmasked.
    # Padded w1 cols / b1 entries are zero -> padded enc lanes are ReLU(0)=0;
    # padded w2 rows are zero -> those lanes contribute nothing downstream;
    # padded w3 cols / b3 entries are zero -> padded dec lanes sliced off.
    H1P = _round_up(h1, LANES)
    NFP = _round_up(n_features, LANES)
    w1 = _pad_axis(w1, H1P, 1)
    b1 = _pad_axis(b1, H1P, 0)
    w2 = _pad_axis(w2, H1P, 0)
    w3 = _pad_axis(w3, NFP, 1)
    b3 = _pad_axis(b3, NFP, 0)

    row = lambda a: a.reshape(1, -1)   # biases as (1, F) rows so they sit in lanes
    return {
        "w0": w0, "b0": row(b0),
        "w1": w1, "b1": row(b1),
        "w2": w2, "b2": row(b2),
        "w3": w3, "b3": row(b3),
    }


# --------------------------------------------------------------------------
# Deterministic synthetic parameters + pure-JAX reference
# --------------------------------------------------------------------------
def init_params(key, n_features, hidden_neurons=(128, 64)):
    h0, h1 = hidden_neurons
    dims_linear = [
        (n_features, h0),  # encoder linear0
        (h0, h1),          # encoder linear1
        (h1, h0),          # decoder linear0
        (h0, n_features),  # decoder final linear
    ]
    bn_dims = [n_features, h0, h1]  # encoder bn0, encoder bn1, decoder bn0

    keys = jax.random.split(key, 16)
    params = {}
    for i, (fin, fout) in enumerate(dims_linear):
        scale = 1.0 / jnp.sqrt(fin)
        params[f"w{i}"] = jax.random.uniform(
            keys[2 * i], (fin, fout), jnp.float32, -scale, scale)
        params[f"b{i}"] = jax.random.uniform(
            keys[2 * i + 1], (fout,), jnp.float32, -scale, scale)
    for i, f in enumerate(bn_dims):
        k = keys[8 + 2 * i]
        k2 = keys[9 + 2 * i]
        params[f"bn{i}_gamma"] = 1.0 + 0.1 * jax.random.normal(k, (f,), jnp.float32)
        params[f"bn{i}_beta"] = 0.1 * jax.random.normal(k2, (f,), jnp.float32)
        params[f"bn{i}_mean"] = 0.05 * jnp.arange(f, dtype=jnp.float32) / f
        params[f"bn{i}_var"] = 1.0 + 0.01 * jnp.arange(f, dtype=jnp.float32) / f
    return params


def _reference_forward(x, params):
    """Pure-JAX reference with explicit (unfolded) eval-mode BatchNorms."""
    def bn(h, i):
        return (h - params[f"bn{i}_mean"]) * jax.lax.rsqrt(
            params[f"bn{i}_var"] + EPS) * params[f"bn{i}_gamma"] + params[f"bn{i}_beta"]

    h = bn(x, 0)
    h = jnp.maximum(h @ params["w0"] + params["b0"], 0.0)
    h = bn(h, 1)
    h = jnp.maximum(h @ params["w1"] + params["b1"], 0.0)
    enc = h
    d = bn(h, 2)
    d = jnp.maximum(d @ params["w2"] + params["b2"], 0.0)
    d = jax.nn.sigmoid(d @ params["w3"] + params["b3"])
    return enc, d


if __name__ == "__main__":
    key = jax.random.PRNGKey(0)
    k_x, k_p = jax.random.split(key)

    B, n_features = 8, 32
    hidden = (128, 64)
    x = jax.random.normal(k_x, (B, n_features), jnp.float32)
    params = init_params(k_p, n_features, hidden_neurons=hidden)

    folded = fold_and_pad_params(params, n_features, hidden_neurons=hidden)
    encoded, decoded = inner_autoencoder_forward(
        x, folded, h1=hidden[1], nf=n_features)
    jax.block_until_ready((encoded, decoded))

    enc_ref, dec_ref = _reference_forward(x, params)
    assert encoded.shape == (B, hidden[1]) and decoded.shape == (B, n_features)
    assert jnp.allclose(encoded, enc_ref, atol=1e-4, rtol=1e-4)
    assert jnp.allclose(decoded, dec_ref, atol=1e-4, rtol=1e-4)

    print("KERNEL_OK")
</pallas_src>

<mosaic_0001>
module attributes {stable_mosaic.version = 11 : i64} {
  func.func @inner_autoencoder_kernel(%arg0: i32, %arg1: memref<8x32xf32, #tpu.memory_space<vmem>>, %arg2: memref<32x128xf32, #tpu.memory_space<vmem>>, %arg3: memref<1x128xf32, #tpu.memory_space<vmem>>, %arg4: memref<128x128xf32, #tpu.memory_space<vmem>>, %arg5: memref<1x128xf32, #tpu.memory_space<vmem>>, %arg6: memref<128x128xf32, #tpu.memory_space<vmem>>, %arg7: memref<1x128xf32, #tpu.memory_space<vmem>>, %arg8: memref<128x128xf32, #tpu.memory_space<vmem>>, %arg9: memref<1x128xf32, #tpu.memory_space<vmem>>, %arg10: memref<8x128xf32, #tpu.memory_space<vmem>>, %arg11: memref<8x128xf32, #tpu.memory_space<vmem>>) attributes {dimension_semantics = [#tpu.dimension_semantics<parallel>], iteration_bounds = array<i64: 1>, scalar_prefetch = 0 : i64, scratch_operands = 0 : i64, tpu.core_type = #tpu.core_type<tc>, window_params = [{transform_indices = @transform_0, window_bounds = array<i64: 8, 32>}, {pipeline_mode = #tpu.pipeline_mode<synchronous>, transform_indices = @transform_1, window_bounds = array<i64: 32, 128>}, {pipeline_mode = #tpu.pipeline_mode<synchronous>, transform_indices = @transform_2, window_bounds = array<i64: 1, 128>}, {pipeline_mode = #tpu.pipeline_mode<synchronous>, transform_indices = @transform_3, window_bounds = array<i64: 128, 128>}, {pipeline_mode = #tpu.pipeline_mode<synchronous>, transform_indices = @transform_4, window_bounds = array<i64: 1, 128>}, {pipeline_mode = #tpu.pipeline_mode<synchronous>, transform_indices = @transform_5, window_bounds = array<i64: 128, 128>}, {pipeline_mode = #tpu.pipeline_mode<synchronous>, transform_indices = @transform_6, window_bounds = array<i64: 1, 128>}, {pipeline_mode = #tpu.pipeline_mode<synchronous>, transform_indices = @transform_7, window_bounds = array<i64: 128, 128>}, {pipeline_mode = #tpu.pipeline_mode<synchronous>, transform_indices = @transform_8, window_bounds = array<i64: 1, 128>}, {transform_indices = @transform_9, window_bounds = array<i64: 8, 128>}, {transform_indices = @transform_10, window_bounds = array<i64: 8, 128>}]} {
    %c0 = arith.constant 0 : index
    %c0_0 = arith.constant 0 : index
    %0 = vector.load %arg1[%c0, %c0_0] : memref<8x32xf32, #tpu.memory_space<vmem>>, vector<8x32xf32>
    %c0_1 = arith.constant 0 : index
    %c0_2 = arith.constant 0 : index
    %1 = vector.load %arg2[%c0_1, %c0_2] : memref<32x128xf32, #tpu.memory_space<vmem>>, vector<32x128xf32>
    %cst = arith.constant dense<0.000000e+00> : vector<8x128xf32>
    %2 = tpu.matmul %0, %1, %cst {dimension_numbers = #tpu.dot_dimension_numbers<[1], [0], [0], [1], [0, 0, 1, 1], [], []>} : vector<8x32xf32>, vector<32x128xf32>, vector<8x128xf32> -> vector<8x128xf32>
    %c0_3 = arith.constant 0 : index
    %c0_4 = arith.constant 0 : index
    %3 = vector.load %arg3[%c0_3, %c0_4] : memref<1x128xf32, #tpu.memory_space<vmem>>, vector<1x128xf32>
    %4 = vector.broadcast %3 : vector<1x128xf32> to vector<8x128xf32>
    %5 = arith.addf %2, %4 : vector<8x128xf32>
    %cst_5 = arith.constant 0.000000e+00 : f32
    %6 = vector.broadcast %cst_5 : f32 to vector<8x128xf32>
    %7 = arith.maximumf %5, %6 : vector<8x128xf32>
    %c0_6 = arith.constant 0 : index
    %c0_7 = arith.constant 0 : index
    %8 = vector.load %arg4[%c0_6, %c0_7] : memref<128x128xf32, #tpu.memory_space<vmem>>, vector<128x128xf32>
    %cst_8 = arith.constant dense<0.000000e+00> : vector<8x128xf32>
    %9 = tpu.matmul %7, %8, %cst_8 {dimension_numbers = #tpu.dot_dimension_numbers<[1], [0], [0], [1], [0, 0, 1, 1], [], []>} : vector<8x128xf32>, vector<128x128xf32>, vector<8x128xf32> -> vector<8x128xf32>
    %c0_9 = arith.constant 0 : index
    %c0_10 = arith.constant 0 : index
    %10 = vector.load %arg5[%c0_9, %c0_10] : memref<1x128xf32, #tpu.memory_space<vmem>>, vector<1x128xf32>
    %11 = vector.broadcast %10 : vector<1x128xf32> to vector<8x128xf32>
    %12 = arith.addf %9, %11 : vector<8x128xf32>
    %cst_11 = arith.constant 0.000000e+00 : f32
    %13 = vector.broadcast %cst_11 : f32 to vector<8x128xf32>
    %14 = arith.maximumf %12, %13 : vector<8x128xf32>
    %c0_12 = arith.constant 0 : index
    %c0_13 = arith.constant 0 : index
    %15 = vector.load %arg10[%c0_12, %c0_13] : memref<8x128xf32, #tpu.memory_space<vmem>>, vector<8x128xf32>
    tpu.vector_store %arg10[%c0_12, %c0_13], %14 {strides = array<i32>} : memref<8x128xf32, #tpu.memory_space<vmem>>, vector<8x128xf32>,
    %c0_14 = arith.constant 0 : index
    %c0_15 = arith.constant 0 : index
    %16 = vector.load %arg6[%c0_14, %c0_15] : memref<128x128xf32, #tpu.memory_space<vmem>>, vector<128x128xf32>
    %cst_16 = arith.constant dense<0.000000e+00> : vector<8x128xf32>
    %17 = tpu.matmul %14, %16, %cst_16 {dimension_numbers = #tpu.dot_dimension_numbers<[1], [0], [0], [1], [0, 0, 1, 1], [], []>} : vector<8x128xf32>, vector<128x128xf32>, vector<8x128xf32> -> vector<8x128xf32>
    %c0_17 = arith.constant 0 : index
    %c0_18 = arith.constant 0 : index
    %18 = vector.load %arg7[%c0_17, %c0_18] : memref<1x128xf32, #tpu.memory_space<vmem>>, vector<1x128xf32>
    %19 = vector.broadcast %18 : vector<1x128xf32> to vector<8x128xf32>
    %20 = arith.addf %17, %19 : vector<8x128xf32>
    %cst_19 = arith.constant 0.000000e+00 : f32
    %21 = vector.broadcast %cst_19 : f32 to vector<8x128xf32>
    %22 = arith.maximumf %20, %21 : vector<8x128xf32>
    %c0_20 = arith.constant 0 : index
    %c0_21 = arith.constant 0 : index
    %23 = vector.load %arg8[%c0_20, %c0_21] : memref<128x128xf32, #tpu.memory_space<vmem>>, vector<128x128xf32>
    %cst_22 = arith.constant dense<0.000000e+00> : vector<8x128xf32>
    %24 = tpu.matmul %22, %23, %cst_22 {dimension_numbers = #tpu.dot_dimension_numbers<[1], [0], [0], [1], [0, 0, 1, 1], [], []>} : vector<8x128xf32>, vector<128x128xf32>, vector<8x128xf32> -> vector<8x128xf32>
    %c0_23 = arith.constant 0 : index
    %c0_24 = arith.constant 0 : index
    %25 = vector.load %arg9[%c0_23, %c0_24] : memref<1x128xf32, #tpu.memory_space<vmem>>, vector<1x128xf32>
    %26 = vector.broadcast %25 : vector<1x128xf32> to vector<8x128xf32>
    %27 = arith.addf %24, %26 : vector<8x128xf32>
    %28 = arith.negf %27 : vector<8x128xf32>
    %29 = math.exp %28 : vector<8x128xf32>
    %cst_25 = arith.constant 1.000000e+00 : f32
    %30 = vector.broadcast %cst_25 : f32 to vector<8x128xf32>
    %31 = arith.addf %30, %29 : vector<8x128xf32>
    %32 = arith.divf %30, %31 : vector<8x128xf32>
    %c0_26 = arith.constant 0 : index
    %c0_27 = arith.constant 0 : index
    %33 = vector.load %arg11[%c0_26, %c0_27] : memref<8x128xf32, #tpu.memory_space<vmem>>, vector<8x128xf32>
    tpu.vector_store %arg11[%c0_26, %c0_27], %32 {strides = array<i32>} : memref<8x128xf32, #tpu.memory_space<vmem>>, vector<8x128xf32>,
    return
  }
  func.func @transform_0(%arg0: i32) -> (i32, i32) {
    %c0_i32 = arith.constant 0 : i32
    %c0_i32_0 = arith.constant 0 : i32
    return %arg0, %c0_i32 : i32, i32
  }
  func.func @transform_1(%arg0: i32) -> (i32, i32) {
    %c0_i32 = arith.constant 0 : i32
    %c0_i32_0 = arith.constant 0 : i32
    %c0_i32_1 = arith.constant 0 : i32
    return %c0_i32, %c0_i32_0 : i32, i32
  }
  func.func @transform_2(%arg0: i32) -> (i32, i32) {
    %c0_i32 = arith.constant 0 : i32
    %c0_i32_0 = arith.constant 0 : i32
    %c0_i32_1 = arith.constant 0 : i32
    return %c0_i32, %c0_i32_0 : i32, i32
  }
  func.func @transform_3(%arg0: i32) -> (i32, i32) {
    %c0_i32 = arith.constant 0 : i32
    %c0_i32_0 = arith.constant 0 : i32
    %c0_i32_1 = arith.constant 0 : i32
    return %c0_i32, %c0_i32_0 : i32, i32
  }
  func.func @transform_4(%arg0: i32) -> (i32, i32) {
    %c0_i32 = arith.constant 0 : i32
    %c0_i32_0 = arith.constant 0 : i32
    %c0_i32_1 = arith.constant 0 : i32
    return %c0_i32, %c0_i32_0 : i32, i32
  }
  func.func @transform_5(%arg0: i32) -> (i32, i32) {
    %c0_i32 = arith.constant 0 : i32
    %c0_i32_0 = arith.constant 0 : i32
    %c0_i32_1 = arith.constant 0 : i32
    return %c0_i32, %c0_i32_0 : i32, i32
  }
  func.func @transform_6(%arg0: i32) -> (i32, i32) {
    %c0_i32 = arith.constant 0 : i32
    %c0_i32_0 = arith.constant 0 : i32
    %c0_i32_1 = arith.constant 0 : i32
    return %c0_i32, %c0_i32_0 : i32, i32
  }
  func.func @transform_7(%arg0: i32) -> (i32, i32) {
    %c0_i32 = arith.constant 0 : i32
    %c0_i32_0 = arith.constant 0 : i32
    %c0_i32_1 = arith.constant 0 : i32
    return %c0_i32, %c0_i32_0 : i32, i32
  }
  func.func @transform_8(%arg0: i32) -> (i32, i32) {
    %c0_i32 = arith.constant 0 : i32
    %c0_i32_0 = arith.constant 0 : i32
    %c0_i32_1 = arith.constant 0 : i32
    return %c0_i32, %c0_i32_0 : i32, i32
  }
  func.func @transform_9(%arg0: i32) -> (i32, i32) {
    %c0_i32 = arith.constant 0 : i32
    %c0_i32_0 = arith.constant 0 : i32
    return %arg0, %c0_i32 : i32, i32
  }
  func.func @transform_10(%arg0: i32) -> (i32, i32) {
    %c0_i32 = arith.constant 0 : i32
    %c0_i32_0 = arith.constant 0 : i32
    return %arg0, %c0_i32 : i32, i32
  }
}

</mosaic_0001>

<bundles_post_ra>
// kernel: inner_autoencoder_forward.1
= control target key start
LH: loop header
LB: loop body
LE: loop exit
PB: predicated region body
PF: predicated region fallthrough
CT: control target
= control target key end

     0   :  { %16 = vsyncpa [#allocation3], 0  ;;  %s1154_s0 = inlined_call_operand.hbm [shape: f32[8,32], index: 0, kind: input, shape index: {}]   ;;  %s1155_s1 = inlined_call_operand.hbm [shape: f32[32,128], index: 1, kind: input, shape index: {}]   ;;  %s1156_s2 = inlined_call_operand.vmem [shape: f32[1,128], index: 2, kind: input, shape index: {}]   ;;  %s1157_s3 = inlined_call_operand.hbm [shape: f32[128,128], index: 3, kind: input, shape index: {}]   ;;  %s1158_s4 = inlined_call_operand.vmem [shape: f32[1,128], index: 4, kind: input, shape index: {}]   ;;  %s1159_s5 = inlined_call_operand.hbm [shape: f32[128,128], index: 5, kind: input, shape index: {}]   ;;  %s1160_s6 = inlined_call_operand.vmem [shape: f32[1,128], index: 6, kind: input, shape index: {}]   ;;  %s1161_s7 = inlined_call_operand.hbm [shape: f32[128,128], index: 7, kind: input, shape index: {}]   ;;  %s1162_s8 = inlined_call_operand.vmem [shape: f32[1,128], index: 8, kind: input, shape index: {}]   ;;  %s1163_s9 = inlined_call_operand.hbm [shape: f32[8,128], index: 9, kind: output, shape index: {0}]   ;;  %s1164_s10 = inlined_call_operand.hbm [shape: f32[8,128], index: 10, kind: output, shape index: {1}]  }
   0x1   :  { %17 = vsyncpa [#allocation6], 0 }
   0x2   :  { %18 = vsyncpa [#allocation9], 0 }
   0x3   :  { %19 = vsyncpa [#allocation4], 0 }
   0x4   :  { %20 = vsyncpa [#allocation13], 0  ;;  %s945_s13 = smov [#allocation5]   ;;  %s781_s17 = scalar_lea.hbm %s1155_s1, 512 }
   0x5   :  { %s36_s14 = sshll.u32 %s945_s13, 4  ;;  %p782_p0 = scmp.ne.s32.totalorder %s1155_s1, %s781_s17  ;;  %s37_s14 = int_to_ptr.vmem [resolvable:$true] %s36_s14 }
   0x6   :  { %p785_p1 = scmp.lt.u32.totalorder %s781_s17, %s1155_s1 }
   0x8   :  { %p787_p2 = pnand %p785_p1, %p782_p0 }
   0xa   :  { %790 = shalt.err (!%p787_p2)
}
   0xb   :  { %s791_s22 = scalar_lea.vmem %s37_s14, 512  ;;  %p796_p4 = scmp.lt.s32.totalorder %s37_s14, %s37_s14 }
   0xc   :  { %p792_p3 = scmp.ne.s32.totalorder %s37_s14, %s791_s22  ;;  %p797_p5 = scmp.lt.s32.totalorder %s791_s22, %s791_s22 }
   0xe   :  { %p798_p6 = por %p797_p5, %p796_p4 }
  0x10   :  { %p799_p7 = pnand %p798_p6, %p792_p3 }
  0x12   :  { %802 = shalt.err (!%p799_p7)
}
  0x13   :  { %s946_s23 = smov 128   ;;  %s947_s24 = smov 8  }
  0x14   :  { %42 = dma.hbm_to_vmem [thread:$0]  %s1155_s1, 512, %s37_s14, [#allocation6], %s946_s23, %s946_s23, %s947_s24  }
  0x15   :  { %s948_s27 = smov [#allocation8]   ;;  %s949_s29 = smov [#allocation2]  }
  0x16   :  { %s64_s28 = sshll.u32 %s948_s27, 4  ;;  %s27_s30 = sshll.u32 %s949_s29, 4  ;;  %s65_s28 = int_to_ptr.vmem [resolvable:$true] %s64_s28  ;;  %s28_s30 = int_to_ptr.vmem [resolvable:$true] %s27_s30 }
  0x17   :  { %s803_s13 = scalar_lea.hbm %s1159_s5, 2048 }
  0x18   :  { %p804_p8 = scmp.ne.s32.totalorder %s1159_s5, %s803_s13  ;;  %p807_p9 = scmp.lt.u32.totalorder %s803_s13, %s1159_s5 }
  0x1a   :  { %p809_p10 = pnand %p807_p9, %p804_p8 }
  0x1c   :  { %812 = shalt.err (!%p809_p10)
}
  0x1d   :  { %s813_s1 = scalar_lea.vmem %s65_s28, 2048  ;;  %p818_p12 = scmp.lt.s32.totalorder %s65_s28, %s65_s28 }
  0x1e   :  { %p814_p11 = scmp.ne.s32.totalorder %s65_s28, %s813_s1  ;;  %p819_p13 = scmp.lt.s32.totalorder %s813_s1, %s813_s1 }
  0x20   :  { %p820_p0 = por %p819_p13, %p818_p12 }
  0x22   :  { %p821_p1 = pnand %p820_p0, %p814_p11 }
  0x24   :  { %824 = shalt.err (!%p821_p1)
}
  0x25   :  { %70 = dma.hbm_to_vmem [thread:$0]  %s1159_s5, 2048, %s65_s28, [#allocation9], %s946_s23, %s946_s23, %s947_s24  }
  0x26   :  { %s825_s22 = scalar_lea.hbm %s1154_s0, 128 }
  0x27   :  { %p826_p2 = scmp.ne.s32.totalorder %s1154_s0, %s825_s22  ;;  %p829_p3 = scmp.lt.u32.totalorder %s825_s22, %s1154_s0 }
  0x29   :  { %p831_p4 = pnand %p829_p3, %p826_p2 }
  0x2b   :  { %834 = shalt.err (!%p831_p4)
}
  0x2c   :  { %s835_s11 = scalar_lea.vmem %s28_s30, 128  ;;  %p840_p6 = scmp.lt.s32.totalorder %s28_s30, %s28_s30 }
  0x2d   :  { %p836_p5 = scmp.ne.s32.totalorder %s28_s30, %s835_s11  ;;  %p841_p7 = scmp.lt.s32.totalorder %s835_s11, %s835_s11 }
  0x2f   :  { %p842_p8 = por %p841_p7, %p840_p6 }
  0x31   :  { %p843_p9 = pnand %p842_p8, %p836_p5 }
  0x33   :  { %846 = shalt.err (!%p843_p9)
}
  0x34   :  { %30 = dma.hbm_to_vmem [thread:$0]  %s1154_s0, 128, %s28_s30, [#allocation3]  }
  0x35   :  { %s950_s12 = smov [#allocation7]   ;;  %s951_s15 = smov [#allocation10]  }
  0x36   :  { %s50_s13 = sshll.u32 %s950_s12, 4  ;;  %s78_s16 = sshll.u32 %s951_s15, 4  ;;  %s51_s13 = int_to_ptr.vmem [resolvable:$true] %s50_s13  ;;  %s79_s16 = int_to_ptr.vmem [resolvable:$true] %s78_s16 }
  0x37   :  { %s847_s1 = scalar_lea.hbm %s1157_s3, 2048 }
  0x38   :  { %p848_p10 = scmp.ne.s32.totalorder %s1157_s3, %s847_s1  ;;  %p851_p11 = scmp.lt.u32.totalorder %s847_s1, %s1157_s3 }
  0x3a   :  { %p853_p12 = pnand %p851_p11, %p848_p10 }
  0x3c   :  { %856 = shalt.err (!%p853_p12)
}
  0x3d   :  { %s857_s0 = scalar_lea.vmem %s51_s13, 2048  ;;  %p862_p0 = scmp.lt.s32.totalorder %s51_s13, %s51_s13 }
  0x3e   :  { %p858_p13 = scmp.ne.s32.totalorder %s51_s13, %s857_s0  ;;  %p863_p1 = scmp.lt.s32.totalorder %s857_s0, %s857_s0 }
  0x40   :  { %p864_p2 = por %p863_p1, %p862_p0 }
  0x42   :  { %p865_p3 = pnand %p864_p2, %p858_p13 }
  0x44   :  { %868 = shalt.err (!%p865_p3)
}
  0x45   :  { %56 = dma.hbm_to_vmem [thread:$0]  %s1157_s3, 2048, %s51_s13, [#allocation6], %s946_s23, %s946_s23, %s947_s24  }
  0x46   :  { %s869_s27 = scalar_lea.hbm %s1161_s7, 2048 }
  0x47   :  { %p870_p4 = scmp.ne.s32.totalorder %s1161_s7, %s869_s27  ;;  %p873_p5 = scmp.lt.u32.totalorder %s869_s27, %s1161_s7 }
  0x49   :  { %p875_p6 = pnand %p873_p5, %p870_p4 }
  0x4b   :  { %878 = shalt.err (!%p875_p6)
}
  0x4c   :  { %s879_s12 = scalar_lea.vmem %s79_s16, 2048  ;;  %p884_p8 = scmp.lt.s32.totalorder %s79_s16, %s79_s16 }
  0x4d   :  { %p880_p7 = scmp.ne.s32.totalorder %s79_s16, %s879_s12  ;;  %p885_p9 = scmp.lt.s32.totalorder %s879_s12, %s879_s12 }
  0x4f   :  { %p886_p10 = por %p885_p9, %p884_p8 }
  0x51   :  { %p887_p11 = pnand %p886_p10, %p880_p7 }
  0x53   :  { %890 = shalt.err (!%p887_p11)
}
  0x54   :  { %84 = dma.hbm_to_vmem [thread:$0]  %s1161_s7, 2048, %s79_s16, [#allocation9], %s946_s23, %s946_s23, %s947_s24  }
  0x55   :  { %935 = dma.done.wait [#allocation3], 128  }
  0x56   :  { %936 = vsyncadd [#allocation3], 4294967168 }
  0x57   :  { %937 = dma.done.wait [#allocation6], 2560  }
  0x58   :  { %938 = vsyncadd [#allocation6], 4294964736 }
  0x59   :  { %939 = dma.done.wait [#allocation9], 4096  }
  0x5a   :  { %940 = vsyncadd [#allocation9], 4294963200  ;;  %v952_v0 = vmov 0.0|0.0   ;;  %vm953_vm0 = vmmov 0   ;;  %v954_v1 = vmov 0.0   ;;  %v103_v2 = vld [vmem:[#allocation5] sm:$0xff] }
  0x5b   :  { %687 = vmatprep.subr.bf16.mxu0 %v952_v0  ;;  %579 = vmatprep.mubr.msk.f32.mxu0 %vm953_vm0, %v954_v1  ;;  %v104_v3 = vld [vmem:[#allocation5 + $0x8] sm:$0xff]  ;;  %v105_v4 = vld [vmem:[#allocation5 + $0x10] sm:$0xff]  ;;  %v106_v6 = vld [vmem:[#allocation5 + $0x18] sm:$0xff]  ;;  %vm114_vm1 = vcmask 261120  }
  0x5c   :  { %693 = vmatprep.subr.bf16.mxu1 %v952_v0  ;;  %614 = vmatprep.mubr.msk.f32.mxu1 %vm953_vm0, %v954_v1  ;;  %v688_v5 = vpack.c.bf16 %v104_v3, %v103_v2  ;;  %v189_v7 = vld [vmem:[#allocation7] sm:$0xff]  ;;  %v190_v8 = vld [vmem:[#allocation7 + $0x8] sm:$0xff]  ;;  %v191_v9 = vld [vmem:[#allocation7 + $0x10] sm:$0xff]  ;;  %v691_v11 = vpack.c.bf16 %v106_v6, %v105_v4 }
  0x5d   :  { %v192_v10 = vld [vmem:[#allocation7 + $0x18] sm:$0xff]  ;;  %v694_v12 = vpack.c.bf16 %v190_v8, %v189_v7  ;;  %v193_v14 = vld [vmem:[#allocation7 + $0x20] sm:$0xff]  ;;  %v194_v15 = vld [vmem:[#allocation7 + $0x28] sm:$0xff] }
  0x5e   :  { %689 = vmatpush3.bf16.msra.mxu0 %v688_v5  ;;  %v697_v13 = vpack.c.bf16 %v192_v10, %v191_v9  ;;  %v102_v16 = vld [vmem:[#allocation2] sm:$0xff]  ;;  %v700_v17 = vpack.c.bf16 %v194_v15, %v193_v14  ;;  %v195_v18 = vld [vmem:[#allocation7 + $0x30] sm:$0xff]  ;;  %v197_v21 = vld [vmem:[#allocation7 + $0x40] sm:$0xff] }
  0x5f   :  { %690 = vmatprep.subr.bf16.mxu0 %v952_v0  ;;  %695 = vmatpush3.bf16.msra.mxu1 %v694_v12  ;;  %v196_v19 = vld [vmem:[#allocation7 + $0x38] sm:$0xff]  ;;  %v198_v22 = vld [vmem:[#allocation7 + $0x48] sm:$0xff]  ;;  %v199_v24 = vld [vmem:[#allocation7 + $0x50] sm:$0xff] }
  0x60   :  { %696 = vmatprep.subr.bf16.mxu1 %v952_v0  ;;  %v703_v20 = vpack.c.bf16 %v196_v19, %v195_v18  ;;  %v706_v23 = vpack.c.bf16 %v198_v22, %v197_v21  ;;  %v200_v25 = vld [vmem:[#allocation7 + $0x58] sm:$0xff]  ;;  %v201_v27 = vld [vmem:[#allocation7 + $0x60] sm:$0xff]  ;;  %v202_v28 = vld [vmem:[#allocation7 + $0x68] sm:$0xff] }
  0x61   :  { %v709_v26 = vpack.c.bf16 %v200_v25, %v199_v24  ;;  %v712_v29 = vpack.c.bf16 %v202_v28, %v201_v27  ;;  %v203_v30 = vld [vmem:[#allocation7 + $0x70] sm:$0xff]  ;;  %v204_v31 = vld [vmem:[#allocation7 + $0x78] sm:$0xff]  ;;  %v284_v33 = vld [vmem:[#allocation8] sm:$0xff] }
  0x62   :  { %692 = vmatpush3.bf16.msra.mxu0 %v691_v11  ;;  %v715_v32 = vpack.c.bf16 %v204_v31, %v203_v30  ;;  %v285_v34 = vld [vmem:[#allocation8 + $0x8] sm:$0xff]  ;;  %v286_v35 = vld [vmem:[#allocation8 + $0x10] sm:$0xff]  ;;  %v287_v37 = vld [vmem:[#allocation8 + $0x18] sm:$0xff] }
  0x63   :  { %717 = vmatprep.subr.bf16.mxu0 %v952_v0  ;;  %698 = vmatpush3.bf16.msra.mxu1 %v697_v13  ;;  %v718_v36 = vpack.c.bf16 %v285_v34, %v284_v33  ;;  %v721_v38 = vpack.c.bf16 %v287_v37, %v286_v35  ;;  %v288_v39 = vld [vmem:[#allocation8 + $0x20] sm:$0xff]  ;;  %v289_v40 = vld [vmem:[#allocation8 + $0x28] sm:$0xff]  ;;  %v290_v42 = vld [vmem:[#allocation8 + $0x30] sm:$0xff] }
  0x64   :  { %699 = vmatprep.subr.bf16.mxu1 %v952_v0  ;;  %v724_v41 = vpack.c.bf16 %v289_v40, %v288_v39  ;;  %v291_v43 = vld [vmem:[#allocation8 + $0x38] sm:$0xff]  ;;  %v292_v45 = vld [vmem:[#allocation8 + $0x40] sm:$0xff]  ;;  %v293_v46 = vld [vmem:[#allocation8 + $0x48] sm:$0xff] }
  0x65   :  { %580 = vmatmul.mubr.msk.f32.vlgmr.msra.gmra.mrb[0].mxu0 %vm114_vm1, %v102_v16  ;;  %v727_v44 = vpack.c.bf16 %v291_v43, %v290_v42  ;;  %v730_v47 = vpack.c.bf16 %v293_v46, %v292_v45  ;;  %v294_v48 = vld [vmem:[#allocation8 + $0x50] sm:$0xff]  ;;  %v295_v49 = vld [vmem:[#allocation8 + $0x58] sm:$0xff]  ;;  %v296_v51 = vld [vmem:[#allocation8 + $0x60] sm:$0xff] }
  0x66   :  { %649 = vmatprep.mubr.msk.f32.mxu0 %vm953_vm0, %v954_v1  ;;  %719 = vmatpush3.bf16.msra.mxu0 %v718_v36  ;;  %v733_v50 = vpack.c.bf16 %v295_v49, %v294_v48  ;;  %v297_v52 = vld [vmem:[#allocation8 + $0x68] sm:$0xff]  ;;  %v509_v54 = vld [vmem:[%s1156_s2] ss:$0 sm:$0xff]  ;;  %v298_v59 = vld [vmem:[#allocation8 + $0x70] sm:$0xff] }
  0x67   :  { %701 = vmatpush3.bf16.msra.mxu1 %v700_v17  ;;  %720 = vmatprep.subr.bf16.mxu0 %v952_v0  ;;  %v736_v53 = vpack.c.bf16 %v297_v52, %v296_v51  ;;  %v299_v60 = vld [vmem:[#allocation8 + $0x78] sm:$0xff]  ;;  %v378_v62 = vld [vmem:[#allocation10] sm:$0xff]  ;;  %v379_v63 = vld [vmem:[#allocation10 + $0x8] sm:$0xff] }
  0x68   :  { %702 = vmatprep.subr.bf16.mxu1 %v952_v0  ;;  %v739_v61 = vpack.c.bf16 %v299_v60, %v298_v59  ;;  %v380_v2 = vld [vmem:[#allocation10 + $0x10] sm:$0xff]  ;;  %v742_v3 = vpack.c.bf16 %v379_v63, %v378_v62  ;;  %v381_v4 = vld [vmem:[#allocation10 + $0x18] sm:$0xff]  ;;  %v382_v6 = vld [vmem:[#allocation10 + $0x20] sm:$0xff] }
  0x69   :  { %v745_v5 = vpack.c.bf16 %v381_v4, %v380_v2  ;;  %v383_v7 = vld [vmem:[#allocation10 + $0x28] sm:$0xff]  ;;  %v385_v9 = vld [vmem:[#allocation10 + $0x38] sm:$0xff]  ;;  %v386_v11 = vld [vmem:[#allocation10 + $0x40] sm:$0xff] }
  0x6a   :  { %722 = vmatpush3.bf16.msra.mxu0 %v721_v38  ;;  %v748_v8 = vpack.c.bf16 %v383_v7, %v382_v6  ;;  %v387_v12 = vld [vmem:[#allocation10 + $0x48] sm:$0xff]  ;;  %v388_v14 = vld [vmem:[#allocation10 + $0x50] sm:$0xff]  ;;  %v389_v15 = vld [vmem:[#allocation10 + $0x58] sm:$0xff] }
  0x6b   :  { %704 = vmatpush3.bf16.msra.mxu1 %v703_v20  ;;  %723 = vmatprep.subr.bf16.mxu0 %v952_v0  ;;  %v754_v13 = vpack.c.bf16 %v387_v12, %v386_v11  ;;  %v757_v16 = vpack.c.bf16 %v389_v15, %v388_v14  ;;  %v390_v17 = vld [vmem:[#allocation10 + $0x60] sm:$0xff]  ;;  %v391_v18 = vld [vmem:[#allocation10 + $0x68] sm:$0xff]  ;;  %v511_v20 = vld [vmem:[%s1158_s4] ss:$0 sm:$0xff]  ;;  %s955_s4 = smov [#allocation11]  }
  0x6c   :  { %705 = vmatprep.subr.bf16.mxu1 %v952_v0  ;;  %v760_v19 = vpack.c.bf16 %v391_v18, %v390_v17  ;;  %v392_v25 = vld [vmem:[#allocation10 + $0x70] sm:$0xff]  ;;  %v512_v28 = vld [vmem:[%s1160_s6] ss:$0 sm:$0xff]  ;;  %s484_s17 = sshll.u32 %s955_s4, 4  ;;  %s485_s17 = int_to_ptr.vmem [resolvable:$true] %s484_s17 }
  0x6d   :  { %s891_s18 = scalar_lea.vmem %s485_s17, 128  ;;  %p896_p13 = scmp.lt.s32.totalorder %s485_s17, %s485_s17 }
  0x6e   :  { %725 = vmatpush3.bf16.msra.mxu0 %v724_v41  ;;  %p892_p12 = scmp.ne.s32.totalorder %s485_s17, %s891_s18  ;;  %p897_p0 = scmp.lt.s32.totalorder %s891_s18, %s891_s18 }
  0x6f   :  { %707 = vmatpush3.bf16.msra.mxu1 %v706_v23  ;;  %726 = vmatprep.subr.bf16.mxu0 %v952_v0 }
  0x70   :  { %708 = vmatprep.subr.bf16.mxu1 %v952_v0  ;;  %p898_p1 = por %p897_p0, %p896_p13 }
  0x72   :  { %728 = vmatpush3.bf16.msra.mxu0 %v727_v44  ;;  %p899_p2 = pnand %p898_p1, %p892_p12 }
  0x73   :  { %710 = vmatpush3.bf16.msra.mxu1 %v709_v26  ;;  %729 = vmatprep.subr.bf16.mxu0 %v952_v0  ;;  %v393_v26 = vld [vmem:[#allocation10 + $0x78] sm:$0xff] }
  0x74   :  { %711 = vmatprep.subr.bf16.mxu1 %v952_v0  ;;  %v763_v27 = vpack.c.bf16 %v393_v26, %v392_v25 }
  0x76   :  { %731 = vmatpush3.bf16.msra.mxu0 %v730_v47 }
  0x77   :  { %713 = vmatpush3.bf16.msra.mxu1 %v712_v29  ;;  %732 = vmatprep.subr.bf16.mxu0 %v952_v0 }
  0x78   :  { %714 = vmatprep.subr.bf16.mxu1 %v952_v0 }
  0x7a   :  { %734 = vmatpush3.bf16.msra.mxu0 %v733_v50 }
  0x7b   :  { %716 = vmatpush3.bf16.msra.mxu1 %v715_v32  ;;  %735 = vmatprep.subr.bf16.mxu0 %v952_v0 }
  0x7c   :  { %741 = vmatprep.subr.bf16.mxu1 %v952_v0 }
  0x7e   :  { %737 = vmatpush3.bf16.msra.mxu0 %v736_v53 }
  0x7f   :  { %738 = vmatprep.subr.bf16.mxu0 %v952_v0 }
  0x82   :  { %740 = vmatpush3.bf16.msra.mxu0 %v739_v61 }
 0x138   :  { %v184_v55 = vpop.f32.mrb[0].mxu0 }
 0x139   :  { %v185_v56 = vadd.f32 %v509_v54, %v184_v55  ;;  %v581_v57 = vpop.f32.mrb[1].mxu0 }
 0x13b   :  { %v188_v58 = vmax.f32 %v185_v56, 0.0 }
 0x13d   :  { %615 = vmatmul.mubr.f32.vlgmr.msra.gmra.mrb[0].mxu1 %v188_v58 }
 0x13e   :  { %684 = vmatprep.mubr.msk.f32.mxu1 %vm953_vm0, %v954_v1  ;;  %743 = vmatpush3.bf16.msra.mxu1 %v742_v3  ;;  %v384_v1 = vld [vmem:[#allocation10 + $0x30] sm:$0xff] }
 0x13f   :  { %744 = vmatprep.subr.bf16.mxu1 %v952_v0  ;;  %v751_v10 = vpack.c.bf16 %v385_v9, %v384_v1 }
 0x142   :  { %746 = vmatpush3.bf16.msra.mxu1 %v745_v5 }
 0x143   :  { %747 = vmatprep.subr.bf16.mxu1 %v952_v0 }
 0x146   :  { %749 = vmatpush3.bf16.msra.mxu1 %v748_v8 }
 0x147   :  { %750 = vmatprep.subr.bf16.mxu1 %v952_v0 }
 0x14a   :  { %752 = vmatpush3.bf16.msra.mxu1 %v751_v10 }
 0x14b   :  { %753 = vmatprep.subr.bf16.mxu1 %v952_v0 }
 0x14e   :  { %755 = vmatpush3.bf16.msra.mxu1 %v754_v13 }
 0x14f   :  { %756 = vmatprep.subr.bf16.mxu1 %v952_v0 }
 0x152   :  { %758 = vmatpush3.bf16.msra.mxu1 %v757_v16 }
 0x153   :  { %759 = vmatprep.subr.bf16.mxu1 %v952_v0 }
 0x156   :  { %761 = vmatpush3.bf16.msra.mxu1 %v760_v19 }
 0x157   :  { %762 = vmatprep.subr.bf16.mxu1 %v952_v0 }
 0x15a   :  { %764 = vmatpush3.bf16.msra.mxu1 %v763_v27 }
 0x210   :  { %v278_v21 = vpop.f32.mrb[0].mxu1 }
 0x211   :  { %v279_v22 = vadd.f32 %v511_v20, %v278_v21  ;;  %v616_v23 = vpop.f32.mrb[1].mxu1 }
 0x213   :  { %v282_v24 = vmax.f32 %v279_v22, 0.0 }
 0x215   :  { %283 = vst [vmem:[#allocation11] sm:$0xff] %v282_v24  ;;  %650 = vmatmul.mubr.f32.vlgmr.msra.gmra.mrb[2].mxu0 %v282_v24 }
 0x2e8   :  { %v373_v29 = vpop.f32.mrb[2].mxu0 }
 0x2e9   :  { %v374_v0 = vadd.f32 %v512_v28, %v373_v29  ;;  %v651_v30 = vpop.f32.mrb[3].mxu0 }
 0x2eb   :  { %v377_v31 = vmax.f32 %v374_v0, 0.0 }
 0x2ed   :  { %685 = vmatmul.mubr.f32.vlgmr.msra.gmra.mrb[2].mxu1 %v377_v31 }
 0x2ee   :  { %902 = shalt.err (!%p899_p2)
}
 0x2ef   :  { %s903_s19 = scalar_lea.hbm %s1163_s9, 128 }
 0x2f0   :  { %p904_p3 = scmp.ne.s32.totalorder %s1163_s9, %s903_s19  ;;  %p907_p4 = scmp.lt.u32.totalorder %s903_s19, %s1163_s9 }
 0x2f2   :  { %p909_p5 = pnand %p907_p4, %p904_p3 }
 0x2f4   :  { %912 = shalt.err (!%p909_p5)
}
 0x2f5   :  { %487 = dma.vmem_to_hbm [thread:$0]  %s485_s17, 128, %s1163_s9, [#allocation4]   ;;  %v513_v32 = vld [vmem:[%s1162_s8] ss:$0 sm:$0xff] }
 0x2f6   :  { %s956_s27 = smov [#allocation12]  }
 0x2f7   :  { %s494_s29 = sshll.u32 %s956_s27, 4  ;;  %s495_s29 = int_to_ptr.vmem [resolvable:$true] %s494_s29 }
 0x2f8   :  { %s913_s11 = scalar_lea.vmem %s495_s29, 128  ;;  %p918_p7 = scmp.lt.s32.totalorder %s495_s29, %s495_s29 }
 0x2f9   :  { %p914_p6 = scmp.ne.s32.totalorder %s495_s29, %s913_s11  ;;  %p919_p8 = scmp.lt.s32.totalorder %s913_s11, %s913_s11 }
 0x2fb   :  { %p920_p9 = por %p919_p8, %p918_p7 }
 0x2fd   :  { %p921_p10 = pnand %p920_p9, %p914_p6 }
 0x3c0   :  { %v467_v33 = vpop.f32.mrb[2].mxu1 }
 0x3c1   :  { %v468_v34 = vadd.f32 %v513_v32, %v467_v33  ;;  %v686_v35 = vpop.f32.mrb[3].mxu1 }
 0x3c3   :  { %v514_v36 = vmul.f32 -1.442695, %v468_v34 }
 0x3c5   :  { %777 = vpow2.f32 %v514_v36 }
 0x3cf   :  { %v778_v37 = vpop.eup %777 }
 0x3d0   :  { %v474_v38 = vadd.f32 1.0, %v778_v37 }
 0x3d2   :  { %779 = vrcp.f32 %v474_v38 }
 0x3dc   :  { %v780_v39 = vpop.eup %779 }
 0x3dd   :  { %477 = vst [vmem:[#allocation12] sm:$0xff] %v780_v39 }
 0x3de   :  { %924 = shalt.err (!%p921_p10)
}
 0x3df   :  { %s925_s5 = scalar_lea.hbm %s1164_s10, 128 }
 0x3e0   :  { %p926_p11 = scmp.ne.s32.totalorder %s1164_s10, %s925_s5  ;;  %p929_p12 = scmp.lt.u32.totalorder %s925_s5, %s1164_s10 }
 0x3e2   :  { %p931_p13 = pnand %p929_p12, %p926_p11 }
 0x3e4   :  { %934 = shalt.err (!%p931_p13)
}
 0x3e5   :  { %497 = dma.vmem_to_hbm [thread:$0]  %s495_s29, 128, %s1164_s10, [#allocation13]  }
 0x3e6   :  { %941 = dma.done.wait [#allocation4], 128  }
 0x3e7   :  { %942 = vsyncadd [#allocation4], 4294967168 }
 0x3e8   :  { %943 = dma.done.wait [#allocation13], 128  }
 0x3e9   :  { %944 = vsyncadd [#allocation13], 4294967168 }
 0x3ea   :  { %504 = vsyncpa [#allocation3], 1 }
 0x3eb   :  { %505 = vsyncpa [#allocation6], 1 }
 0x3ec   :  { %506 = vsyncpa [#allocation9], 1 }
 0x3ed   :  { %507 = vsyncpa [#allocation4], 1 }
 0x3ee   :  { %508 = vsyncpa [#allocation13], 1 }

</bundles_post_ra>
